<compile_context>
chip_gen: v5e
topology: v5e:2x2
jax: 0.10.0
libtpu: 0.0.40
codegen_flags: <defaults>
</compile_context>

<pallas_src>
from functools import partial

import jax
import jax.numpy as jnp
from jax import lax
from jax.experimental import pallas as pl
from jax.experimental.pallas import tpu as pltpu


def _grouping_kernel(x_ref, wk_ref, w2s_ref, negs_ref, params_ref,
                     out_ref, assign_ref, qx_acc, sa_acc):
    # x_ref:      (bb, C, thw)  batch block x spatial tile (compute dtype)
    # wk_ref:     (K, C)        grouping centers (f32)
    # w2s_ref:    (K, C)        2*w/beta          (compute dtype)
    # negs_ref:   (K, C)        -1/beta per row   (compute dtype)
    # params_ref: (K, 2)        [ ||c||^2/beta , sqrt(2/beta) ]  (f32)
    # out_ref:    (bb, K, C)    normalized part features (written at last hw step)
    # assign_ref: (bb, K, thw)  soft assignments for this spatial tile
    # qx_acc:     (bb, K, C)    f32 accumulator across hw tiles
    # sa_acc:     (bb, K, 1)    f32 accumulator across hw tiles
    j = pl.program_id(1)
    bb = x_ref.shape[0]

    @pl.when(j == 0)
    def _init():
        qx_acc[...] = jnp.zeros_like(qx_acc)
        sa_acc[...] = jnp.zeros_like(sa_acc)

    w2s = w2s_ref[...]                 # (K, C)
    negs = negs_ref[...]               # (K, C)
    csq = params_ref[:, 0:1]           # (K, 1)  ||c||^2 / beta
    inv_sigma = params_ref[:, 1:2]     # (K, 1)  sqrt(2 / beta)

    for b in range(bb):                # bb is small (<= 8); static unroll
        x_b = x_ref[b]                 # (C, thw)
        # (2<w,x> - ||x||^2) / beta, both terms on the MXU (no channel reduce,
        # no concat): w2s @ x  +  negs @ (x*x).
        d = (jnp.dot(w2s, x_b, preferred_element_type=jnp.float32)
             + jnp.dot(negs, x_b * x_b, preferred_element_type=jnp.float32))
        logits = jnp.minimum(d - csq, 0.0)                     # (K, thw)
        # softmax over parts (sublane axis); keep the max-subtraction, logits
        # are -||x-c||^2/beta and can be very negative.
        logits = logits - jnp.max(logits, axis=0, keepdims=True)
        e = jnp.exp(logits)
        denom = jnp.sum(e, axis=0, keepdims=True)              # (1, thw), >= 1
        assign_b = e * pl.reciprocal(denom, approx=True)       # (K, thw) f32
        assign_ref[b] = assign_b.astype(assign_ref.dtype)

        # qx += assign @ x^T : contract the spatial (lane) axis of both
        # operands -- flash-attention's q@k^T pattern, no explicit transpose.
        p = assign_b.astype(x_b.dtype)
        qx_b = lax.dot_general(p, x_b, (((1,), (1,)), ((), ())),
                               preferred_element_type=jnp.float32)  # (K, C)
        qx_acc[b] = qx_acc[b] + qx_b
        sa_acc[b] = sa_acc[b] + jnp.sum(assign_b, axis=1, keepdims=True)

    @pl.when(j == pl.num_programs(1) - 1)
    def _finalize():
        wk = wk_ref[...].astype(jnp.float32)                   # (K, C)
        for b in range(bb):
            sa = jnp.maximum(sa_acc[b], 1e-5)                  # (K, 1)
            out_b = (qx_acc[b] * pl.reciprocal(sa, approx=True) - wk) * inv_sigma
            # F.normalize(out, dim=-1): v / max(||v||, 1e-12)
            nrm2 = jnp.sum(out_b * out_b, axis=1, keepdims=True)
            out_ref[b] = (out_b * lax.rsqrt(jnp.maximum(nrm2, 1e-24))
                          ).astype(out_ref.dtype)


def _vmem_caps():
    """Generation-aware scoped-VMEM ceiling and per-block budget (bytes)."""
    try:
        cap = int(pltpu.get_tpu_info().vmem_capacity_bytes)
    except Exception:                       # conservative fallback
        cap = 64 * 1024 * 1024
    if cap <= 64 * 1024 * 1024:             # v7x-class: 64 MiB physical per TC
        limit = 48 * 1024 * 1024            # leave room for Mosaic internals
    else:                                   # v5e / v6e: 128 MiB physical
        limit = 100 * 1024 * 1024
    return limit, int(limit * 0.75)


def _block_bytes(bb, thw, C, K, isz):
    """Per-grid-step VMEM footprint: double-buffered blocks + scratch + temps."""
    io = 2 * bb * C * thw * isz             # x block (2x-buffered)
    io += 2 * bb * K * thw * 4              # assign block (2x-buffered)
    io += 2 * bb * K * C * 4                # out block
    consts = 2 * (3 * K * C * 4 + K * 2 * 4)
    scratch = bb * K * C * 4 + bb * K * 128 * 4
    temps = bb * (C * thw * isz + 6 * K * thw * 4)   # x*x, d/logits/e/assign
    return io + consts + scratch + temps


def _pick_tiles(B, C, HW, K, isz, budget):
    """Pick (batch block, hw tile): keep >= 2 batch grid steps (v7x megacore /
    pipelining), make the spatial tile a multiple of 128 lanes, fit the budget."""
    hw_cands = sorted({d for d in range(128, HW + 1, 128) if HW % d == 0} | {HW},
                      reverse=True)
    bb_cands = [d for d in range(min(B, 8), 0, -1)
                if B % d == 0 and (B // d >= 2 or B == 1)]
    for thw in hw_cands:
        for bb in bb_cands:
            if _block_bytes(bb, thw, C, K, isz) <= budget:
                return bb, thw
    return 1, hw_cands[-1]


@partial(jax.jit, static_argnames=("compute_dtype",))
def grouping_unit_forward(x, weight, smooth_factor, compute_dtype=jnp.float32):
    """x: (B,C,H,W), weight: (K,C,1,1), smooth_factor: (K,).

    Returns (outputs_t, assign) of shapes (B, C, K) and (B, K, H, W), matching
    GroupingUnit.forward.  compute_dtype=jnp.bfloat16 halves HBM traffic of the
    matmul operands (accumulation stays f32)."""
    B, C, H, W = x.shape
    K = weight.shape[0]
    HW = H * W

    x_flat = x.reshape(B, C, HW).astype(compute_dtype)
    w2d = weight.reshape(K, C).astype(jnp.float32)

    # ---- batch-invariant precompute, hoisted out of the kernel --------------
    beta = jax.nn.sigmoid(smooth_factor.astype(jnp.float32))        # (K,)
    inv_beta = 1.0 / beta
    w2s = (2.0 * w2d * inv_beta[:, None]).astype(compute_dtype)     # (K, C)
    negs = jnp.broadcast_to(-inv_beta[:, None], (K, C)).astype(compute_dtype)
    c_sq_s = jnp.sum(w2d * w2d, axis=1) * inv_beta                  # (K,)
    inv_sigma = lax.rsqrt(beta * 0.5)                               # sqrt(2/beta)
    params = jnp.stack([c_sq_s, inv_sigma], axis=1)                 # (K, 2) f32

    isz = jnp.dtype(compute_dtype).itemsize
    gen_limit, budget = _vmem_caps()
    bb, thw = _pick_tiles(B, C, HW, K, isz, budget)
    vmem_limit = int(min(gen_limit,
                         max(32 * 1024 * 1024,
                             2 * _block_bytes(bb, thw, C, K, isz))))
    grid = (B // bb, HW // thw)

    out, assign = pl.pallas_call(
        _grouping_kernel,
        out_shape=(
            jax.ShapeDtypeStruct((B, K, C), jnp.float32),
            jax.ShapeDtypeStruct((B, K, HW), jnp.float32),
        ),
        grid=grid,
        in_specs=[
            pl.BlockSpec((bb, C, thw), lambda i, j: (i, 0, j)),   # x block
            pl.BlockSpec((K, C), lambda i, j: (0, 0)),            # centers
            pl.BlockSpec((K, C), lambda i, j: (0, 0)),            # 2*w/beta
            pl.BlockSpec((K, C), lambda i, j: (0, 0)),            # -1/beta rows
            pl.BlockSpec((K, 2), lambda i, j: (0, 0)),            # [c_sq/beta, 1/sigma]
        ],
        out_specs=(
            pl.BlockSpec((bb, K, C), lambda i, j: (i, 0, 0)),     # resident over hw
            pl.BlockSpec((bb, K, thw), lambda i, j: (i, 0, j)),
        ),
        scratch_shapes=[
            pltpu.VMEM((bb, K, C), jnp.float32),                  # qx accumulator
            pltpu.VMEM((bb, K, 1), jnp.float32),                  # sum_ass accumulator
        ],
        compiler_params=pltpu.CompilerParams(
            dimension_semantics=("parallel", "arbitrary"),
            vmem_limit_bytes=vmem_limit,
        ),
    )(x_flat, w2d, w2s, negs, params)

    outputs_t = jnp.transpose(out, (0, 2, 1))        # (B, C, K)
    assign = assign.reshape(B, K, H, W)              # (B, K, H, W)
    return outputs_t, assign


def _reference_forward(x, weight, smooth_factor):
    """Pure-JAX re-implementation of the PyTorch forward for validation."""
    B, C, H, W = x.shape
    K = weight.shape[0]
    HW = H * W
    centers = weight.reshape(1, K, C)
    x_flat = x.reshape(B, C, HW)
    cx = jnp.einsum("okc,bcn->bkn", centers, x_flat)
    x_sq = jnp.sum(x_flat ** 2, axis=1, keepdims=True)
    c_sq = jnp.sum(centers ** 2, axis=2)[..., None]
    beta = jax.nn.sigmoid(smooth_factor)[None, :, None]
    logits = jnp.minimum(2 * cx - x_sq - c_sq, 0.0) / beta
    assign = jax.nn.softmax(logits, axis=1)
    qx = jnp.einsum("bkn,bcn->bkc", assign, x_flat)
    sum_ass = jnp.maximum(jnp.sum(assign, axis=2, keepdims=True), 1e-5)
    sigma = jnp.sqrt(jax.nn.sigmoid(smooth_factor) / 2.0)[None, :, None]
    out = (qx / sum_ass - centers) / sigma
    norm = jnp.sqrt(jnp.sum(out ** 2, axis=2, keepdims=True))
    out = out / jnp.maximum(norm, 1e-12)
    return jnp.transpose(out, (0, 2, 1)), assign.reshape(B, K, H, W)


if __name__ == "__main__":
    # Small shapes consistent with the module: B=2, C=32, H=W=16, K=8 parts.
    B, C, H, W, K = 2, 32, 16, 16, 8

    key = jax.random.PRNGKey(0)
    kx, kw = jax.random.split(key)

    x = jax.random.normal(kx, (B, C, H, W), dtype=jnp.float32)

    # Deterministic init mirroring reset_parameters(): kaiming_normal_
    # (fan_in=C, gain=sqrt(2)) then clamp(min=1e-5); smooth_factor = 0.
    weight = jax.random.normal(kw, (K, C, 1, 1), dtype=jnp.float32) * jnp.sqrt(2.0 / C)
    weight = jnp.maximum(weight, 1e-5)
    smooth_factor = jnp.zeros((K,), dtype=jnp.float32)

    ref_out, ref_assign = _reference_forward(x, weight, smooth_factor)

    # f32 path (matches the PyTorch module's default precision).
    outputs_t, assign = grouping_unit_forward(x, weight, smooth_factor)
    jax.block_until_ready((outputs_t, assign))
    assert outputs_t.shape == (B, C, K)
    assert assign.shape == (B, K, H, W)
    assert jnp.allclose(outputs_t, ref_out, atol=2e-3, rtol=2e-3)
    assert jnp.allclose(assign, ref_assign, atol=2e-3, rtol=2e-3)

    # bf16 bandwidth path (production option): same kernel, bf16 matmul
    # operands with f32 accumulation; validated at looser tolerance.
    out_bf, assign_bf = grouping_unit_forward(
        x, weight, smooth_factor, compute_dtype=jnp.bfloat16)
    jax.block_until_ready((out_bf, assign_bf))
    assert jnp.allclose(out_bf, ref_out, atol=5e-2, rtol=5e-2)
    assert jnp.allclose(assign_bf, ref_assign, atol=5e-2, rtol=5e-2)

    print("KERNEL_OK")
</pallas_src>

<mosaic_0001>
module attributes {stable_mosaic.version = 11 : i64} {
  func.func @_grouping_kernel(%arg0: i32, %arg1: i32, %arg2: memref<1x32x256xf32, #tpu.memory_space<vmem>>, %arg3: memref<8x32xf32, #tpu.memory_space<vmem>>, %arg4: memref<8x32xf32, #tpu.memory_space<vmem>>, %arg5: memref<8x32xf32, #tpu.memory_space<vmem>>, %arg6: memref<8x2xf32, #tpu.memory_space<vmem>>, %arg7: memref<1x8x32xf32, #tpu.memory_space<vmem>>, %arg8: memref<1x8x256xf32, #tpu.memory_space<vmem>>, %arg9: memref<1x8x32xf32, #tpu.memory_space<vmem>>, %arg10: memref<1x8x1xf32, #tpu.memory_space<vmem>>) attributes {dimension_semantics = [#tpu.dimension_semantics<parallel>, #tpu.dimension_semantics<arbitrary>], iteration_bounds = array<i64: 2, 1>, scalar_prefetch = 0 : i64, scratch_operands = 2 : i64, tpu.core_type = #tpu.core_type<tc>, window_params = [{transform_indices = @transform_0, window_bounds = array<i64: 1, 32, 256>}, {pipeline_mode = #tpu.pipeline_mode<synchronous>, transform_indices = @transform_1, window_bounds = array<i64: 8, 32>}, {pipeline_mode = #tpu.pipeline_mode<synchronous>, transform_indices = @transform_2, window_bounds = array<i64: 8, 32>}, {pipeline_mode = #tpu.pipeline_mode<synchronous>, transform_indices = @transform_3, window_bounds = array<i64: 8, 32>}, {pipeline_mode = #tpu.pipeline_mode<synchronous>, transform_indices = @transform_4, window_bounds = array<i64: 8, 2>}, {transform_indices = @transform_5, window_bounds = array<i64: 1, 8, 32>}, {transform_indices = @transform_6, window_bounds = array<i64: 1, 8, 256>}]} {
    %c0_i32 = arith.constant 0 : i32
    %0 = arith.cmpi eq, %arg1, %c0_i32 : i32
    %1 = arith.extui %0 : i1 to i32
    %c0_i32_0 = arith.constant 0 : i32
    %2 = arith.cmpi ne, %1, %c0_i32_0 : i32
    scf.if %2 {
      %cst_33 = arith.constant 0.000000e+00 : f32
      %48 = vector.broadcast %cst_33 : f32 to vector<1x8x32xf32>
      %c0_34 = arith.constant 0 : index
      %c0_35 = arith.constant 0 : index
      %c0_36 = arith.constant 0 : index
      %49 = vector.load %arg9[%c0_34, %c0_35, %c0_36] : memref<1x8x32xf32, #tpu.memory_space<vmem>>, vector<1x8x32xf32>
      tpu.vector_store %arg9[%c0_34, %c0_35, %c0_36], %48 {strides = array<i32>} : memref<1x8x32xf32, #tpu.memory_space<vmem>>, vector<1x8x32xf32>,
      %cst_37 = arith.constant 0.000000e+00 : f32
      %50 = vector.broadcast %cst_37 : f32 to vector<1x8x1xf32>
      %c0_38 = arith.constant 0 : index
      %c0_39 = arith.constant 0 : index
      %c0_40 = arith.constant 0 : index
      %51 = vector.load %arg10[%c0_38, %c0_39, %c0_40] : memref<1x8x1xf32, #tpu.memory_space<vmem>>, vector<1x8x1xf32>
      tpu.vector_store %arg10[%c0_38, %c0_39, %c0_40], %50 {strides = array<i32>} : memref<1x8x1xf32, #tpu.memory_space<vmem>>, vector<1x8x1xf32>,
    } else {
    }
    %c0 = arith.constant 0 : index
    %c0_1 = arith.constant 0 : index
    %3 = vector.load %arg4[%c0, %c0_1] : memref<8x32xf32, #tpu.memory_space<vmem>>, vector<8x32xf32>
    %c0_2 = arith.constant 0 : index
    %c0_3 = arith.constant 0 : index
    %4 = vector.load %arg5[%c0_2, %c0_3] : memref<8x32xf32, #tpu.memory_space<vmem>>, vector<8x32xf32>
    %c0_4 = arith.constant 0 : index
    %c0_5 = arith.constant 0 : index
    %5 = vector.load %arg6[%c0_4, %c0_5] : memref<8x2xf32, #tpu.memory_space<vmem>>, vector<8x1xf32>
    %c0_6 = arith.constant 0 : index
    %c1 = arith.constant 1 : index
    %6 = vector.load %arg6[%c0_6, %c1] : memref<8x2xf32, #tpu.memory_space<vmem>>, vector<8x1xf32>
    %c0_7 = arith.constant 0 : index
    %c0_8 = arith.constant 0 : index
    %c0_9 = arith.constant 0 : index
    %7 = vector.load %arg2[%c0_7, %c0_8, %c0_9] : memref<1x32x256xf32, #tpu.memory_space<vmem>>, vector<1x32x256xf32>
    %8 = vector.shape_cast %7 : vector<1x32x256xf32> to vector<32x256xf32>
    %cst = arith.constant dense<0.000000e+00> : vector<8x256xf32>
    %9 = tpu.matmul %3, %8, %cst {dimension_numbers = #tpu.dot_dimension_numbers<[1], [0], [0], [1], [0, 0, 1, 1], [], []>} : vector<8x32xf32>, vector<32x256xf32>, vector<8x256xf32> -> vector<8x256xf32>
    %10 = arith.mulf %8, %8 : vector<32x256xf32>
    %cst_10 = arith.constant dense<0.000000e+00> : vector<8x256xf32>
    %11 = tpu.matmul %4, %10, %cst_10 {dimension_numbers = #tpu.dot_dimension_numbers<[1], [0], [0], [1], [0, 0, 1, 1], [], []>} : vector<8x32xf32>, vector<32x256xf32>, vector<8x256xf32> -> vector<8x256xf32>
    %12 = arith.addf %9, %11 : vector<8x256xf32>
    %13 = vector.broadcast %5 : vector<8x1xf32> to vector<8x256xf32>
    %14 = arith.subf %12, %13 : vector<8x256xf32>
    %cst_11 = arith.constant 0.000000e+00 : f32
    %15 = vector.broadcast %cst_11 : f32 to vector<8x256xf32>
    %16 = arith.minimumf %14, %15 : vector<8x256xf32>
    %cst_12 = arith.constant dense<0xFF800000> : vector<256xf32>
    %17 = vector.multi_reduction <maximumf>, %16, %cst_12 [0] : vector<8x256xf32> to vector<256xf32>
    %18 = vector.shape_cast %17 : vector<256xf32> to vector<1x256xf32>
    %19 = vector.broadcast %18 : vector<1x256xf32> to vector<8x256xf32>
    %20 = arith.subf %16, %19 : vector<8x256xf32>
    %21 = math.exp %20 : vector<8x256xf32>
    %cst_13 = arith.constant dense<0.000000e+00> : vector<256xf32>
    %22 = vector.multi_reduction <add>, %21, %cst_13 [0] : vector<8x256xf32> to vector<256xf32>
    %23 = vector.shape_cast %22 : vector<256xf32> to vector<1x256xf32>
    %24 = tpu.reciprocal %23 {approx = true} : vector<1x256xf32> -> vector<1x256xf32>
    %25 = vector.broadcast %24 : vector<1x256xf32> to vector<8x256xf32>
    %26 = arith.mulf %21, %25 : vector<8x256xf32>
    %c0_14 = arith.constant 0 : index
    %c0_15 = arith.constant 0 : index
    %c0_16 = arith.constant 0 : index
    %27 = vector.load %arg8[%c0_14, %c0_15, %c0_16] : memref<1x8x256xf32, #tpu.memory_space<vmem>>, vector<1x8x256xf32>
    %28 = vector.shape_cast %27 : vector<1x8x256xf32> to vector<8x256xf32>
    %29 = vector.shape_cast %26 : vector<8x256xf32> to vector<1x8x256xf32>
    tpu.vector_store %arg8[%c0_14, %c0_15, %c0_16], %29 {strides = array<i32>} : memref<1x8x256xf32, #tpu.memory_space<vmem>>, vector<1x8x256xf32>,
    %cst_17 = arith.constant dense<0.000000e+00> : vector<8x32xf32>
    %30 = tpu.matmul %26, %8, %cst_17 {dimension_numbers = #tpu.dot_dimension_numbers<[1], [1], [0], [0], [0, 0, 1, 0], [], []>} : vector<8x256xf32>, vector<32x256xf32>, vector<8x32xf32> -> vector<8x32xf32>
    %c0_18 = arith.constant 0 : index
    %c0_19 = arith.constant 0 : index
    %c0_20 = arith.constant 0 : index
    %31 = vector.load %arg9[%c0_18, %c0_19, %c0_20] : memref<1x8x32xf32, #tpu.memory_space<vmem>>, vector<1x8x32xf32>
    %32 = vector.shape_cast %31 : vector<1x8x32xf32> to vector<8x32xf32>
    %33 = arith.addf %32, %30 : vector<8x32xf32>
    %c0_21 = arith.constant 0 : index
    %c0_22 = arith.constant 0 : index
    %c0_23 = arith.constant 0 : index
    %34 = vector.load %arg9[%c0_21, %c0_22, %c0_23] : memref<1x8x32xf32, #tpu.memory_space<vmem>>, vector<1x8x32xf32>
    %35 = vector.shape_cast %34 : vector<1x8x32xf32> to vector<8x32xf32>
    %36 = vector.shape_cast %33 : vector<8x32xf32> to vector<1x8x32xf32>
    tpu.vector_store %arg9[%c0_21, %c0_22, %c0_23], %36 {strides = array<i32>} : memref<1x8x32xf32, #tpu.memory_space<vmem>>, vector<1x8x32xf32>,
    %c0_24 = arith.constant 0 : index
    %c0_25 = arith.constant 0 : index
    %c0_26 = arith.constant 0 : index
    %37 = vector.load %arg10[%c0_24, %c0_25, %c0_26] : memref<1x8x1xf32, #tpu.memory_space<vmem>>, vector<1x8x1xf32>
    %38 = vector.shape_cast %37 : vector<1x8x1xf32> to vector<8x1xf32>
    %cst_27 = arith.constant dense<0.000000e+00> : vector<8xf32>
    %39 = vector.multi_reduction <add>, %26, %cst_27 [1] : vector<8x256xf32> to vector<8xf32>
    %40 = vector.shape_cast %39 : vector<8xf32> to vector<8x1xf32>
    %41 = arith.addf %38, %40 : vector<8x1xf32>
    %c0_28 = arith.constant 0 : index
    %c0_29 = arith.constant 0 : index
    %c0_30 = arith.constant 0 : index
    %42 = vector.load %arg10[%c0_28, %c0_29, %c0_30] : memref<1x8x1xf32, #tpu.memory_space<vmem>>, vector<1x8x1xf32>
    %43 = vector.shape_cast %42 : vector<1x8x1xf32> to vector<8x1xf32>
    %44 = vector.shape_cast %41 : vector<8x1xf32> to vector<1x8x1xf32>
    tpu.vector_store %arg10[%c0_28, %c0_29, %c0_30], %44 {strides = array<i32>} : memref<1x8x1xf32, #tpu.memory_space<vmem>>, vector<1x8x1xf32>,
    %c0_i32_31 = arith.constant 0 : i32
    %45 = arith.cmpi eq, %arg1, %c0_i32_31 : i32
    %46 = arith.extui %45 : i1 to i32
    %c0_i32_32 = arith.constant 0 : i32
    %47 = arith.cmpi ne, %46, %c0_i32_32 : i32
    scf.if %47 {
      %c0_33 = arith.constant 0 : index
      %c0_34 = arith.constant 0 : index
      %48 = vector.load %arg3[%c0_33, %c0_34] : memref<8x32xf32, #tpu.memory_space<vmem>>, vector<8x32xf32>
      %c0_35 = arith.constant 0 : index
      %c0_36 = arith.constant 0 : index
      %c0_37 = arith.constant 0 : index
      %49 = vector.load %arg10[%c0_35, %c0_36, %c0_37] : memref<1x8x1xf32, #tpu.memory_space<vmem>>, vector<1x8x1xf32>
      %50 = vector.shape_cast %49 : vector<1x8x1xf32> to vector<8x1xf32>
      %cst_38 = arith.constant 9.99999974E-6 : f32
      %51 = vector.broadcast %cst_38 : f32 to vector<8x1xf32>
      %52 = arith.maximumf %50, %51 : vector<8x1xf32>
      %c0_39 = arith.constant 0 : index
      %c0_40 = arith.constant 0 : index
      %c0_41 = arith.constant 0 : index
      %53 = vector.load %arg9[%c0_39, %c0_40, %c0_41] : memref<1x8x32xf32, #tpu.memory_space<vmem>>, vector<1x8x32xf32>
      %54 = vector.shape_cast %53 : vector<1x8x32xf32> to vector<8x32xf32>
      %55 = tpu.reciprocal %52 {approx = true} : vector<8x1xf32> -> vector<8x1xf32>
      %56 = vector.broadcast %55 : vector<8x1xf32> to vector<8x32xf32>
      %57 = arith.mulf %54, %56 : vector<8x32xf32>
      %58 = arith.subf %57, %48 : vector<8x32xf32>
      %59 = vector.broadcast %6 : vector<8x1xf32> to vector<8x32xf32>
      %60 = arith.mulf %58, %59 : vector<8x32xf32>
      %61 = arith.mulf %60, %60 : vector<8x32xf32>
      %cst_42 = arith.constant dense<0.000000e+00> : vector<8xf32>
      %62 = vector.multi_reduction <add>, %61, %cst_42 [1] : vector<8x32xf32> to vector<8xf32>
      %63 = vector.shape_cast %62 : vector<8xf32> to vector<8x1xf32>
      %cst_43 = arith.constant 1.000000e-24 : f32
      %64 = vector.broadcast %cst_43 : f32 to vector<8x1xf32>
      %65 = arith.maximumf %63, %64 : vector<8x1xf32>
      %66 = math.rsqrt %65 : vector<8x1xf32>
      %67 = vector.broadcast %66 : vector<8x1xf32> to vector<8x32xf32>
      %68 = arith.mulf %60, %67 : vector<8x32xf32>
      %c0_44 = arith.constant 0 : index
      %c0_45 = arith.constant 0 : index
      %c0_46 = arith.constant 0 : index
      %69 = vector.load %arg7[%c0_44, %c0_45, %c0_46] : memref<1x8x32xf32, #tpu.memory_space<vmem>>, vector<1x8x32xf32>
      %70 = vector.shape_cast %69 : vector<1x8x32xf32> to vector<8x32xf32>
      %71 = vector.shape_cast %68 : vector<8x32xf32> to vector<1x8x32xf32>
      tpu.vector_store %arg7[%c0_44, %c0_45, %c0_46], %71 {strides = array<i32>} : memref<1x8x32xf32, #tpu.memory_space<vmem>>, vector<1x8x32xf32>,
    } else {
    }
    return
  }
  func.func @transform_0(%arg0: i32, %arg1: i32) -> (i32, i32, i32) {
    %c0_i32 = arith.constant 0 : i32
    %c0_i32_0 = arith.constant 0 : i32
    return %arg0, %c0_i32, %arg1 : i32, i32, i32
  }
  func.func @transform_1(%arg0: i32, %arg1: i32) -> (i32, i32) {
    %c0_i32 = arith.constant 0 : i32
    %c0_i32_0 = arith.constant 0 : i32
    %c0_i32_1 = arith.constant 0 : i32
    return %c0_i32, %c0_i32_0 : i32, i32
  }
  func.func @transform_2(%arg0: i32, %arg1: i32) -> (i32, i32) {
    %c0_i32 = arith.constant 0 : i32
    %c0_i32_0 = arith.constant 0 : i32
    %c0_i32_1 = arith.constant 0 : i32
    return %c0_i32, %c0_i32_0 : i32, i32
  }
  func.func @transform_3(%arg0: i32, %arg1: i32) -> (i32, i32) {
    %c0_i32 = arith.constant 0 : i32
    %c0_i32_0 = arith.constant 0 : i32
    %c0_i32_1 = arith.constant 0 : i32
    return %c0_i32, %c0_i32_0 : i32, i32
  }
  func.func @transform_4(%arg0: i32, %arg1: i32) -> (i32, i32) {
    %c0_i32 = arith.constant 0 : i32
    %c0_i32_0 = arith.constant 0 : i32
    %c0_i32_1 = arith.constant 0 : i32
    return %c0_i32, %c0_i32_0 : i32, i32
  }
  func.func @transform_5(%arg0: i32, %arg1: i32) -> (i32, i32, i32) {
    %c0_i32 = arith.constant 0 : i32
    %c0_i32_0 = arith.constant 0 : i32
    %c0_i32_1 = arith.constant 0 : i32
    return %arg0, %c0_i32, %c0_i32_0 : i32, i32, i32
  }
  func.func @transform_6(%arg0: i32, %arg1: i32) -> (i32, i32, i32) {
    %c0_i32 = arith.constant 0 : i32
    %c0_i32_0 = arith.constant 0 : i32
    return %arg0, %c0_i32, %arg1 : i32, i32, i32
  }
}

</mosaic_0001>

<bundles_post_ra>
// kernel: grouping_unit_forward.1
= control target key start
LH: loop header
LB: loop body
LE: loop exit
PB: predicated region body
PF: predicated region fallthrough
CT: control target
= control target key end

     0   :  { %12 = vsyncpa [#allocation5], 0  ;;  %s1029_s0 = inlined_call_operand.vmem [shape: f32[2,32,256], index: 0, kind: input, shape index: {}]   ;;  %s1030_s1 = inlined_call_operand.vmem [shape: f32[8,32], index: 1, kind: input, shape index: {}]   ;;  %s1031_s2 = inlined_call_operand.vmem [shape: f32[8,32], index: 2, kind: input, shape index: {}]   ;;  %s1032_s3 = inlined_call_operand.vmem [shape: f32[8,32], index: 3, kind: input, shape index: {}]   ;;  %s1033_s4 = inlined_call_operand.vmem [shape: f32[8,2], index: 4, kind: input, shape index: {}]   ;;  %s1034_s5 = inlined_call_operand.hbm [shape: f32[2,8,32], index: 5, kind: output, shape index: {0}]   ;;  %s1035_s6 = inlined_call_operand.vmem [shape: f32[2,8,256], index: 6, kind: output, shape index: {1}]  }
   0x1   :  { %14 = vsyncpa [#allocation5 + $0x1], 0  ;;  %s899_s21 = smov 0   ;;  %s901_s22 = smov 0  }
   0x2   :  { %s903_s23 = smov 0   ;;  %s905_s24 = smov 0  }
   0x3   :  { %s907_s25 = smov 0   ;;  %s909_s26 = smov 0  }
   0x4 LB: > { %s687_s27 = sadd.s32 4294967295, %s859_s26   ;;  %s688_s28 = sadd.s32 4294967294, %s859_s26   ;;  %s859_s26 = sphi %s909_s26, %s20_s26   ;;  %s855_s25 = sphi %s907_s25, %s1042_s25   ;;  %s851_s24 = sphi %s905_s24, %s1041_s24   ;;  %s847_s23 = sphi %s903_s23, %s1040_s23   ;;  %s843_s22 = sphi %s901_s22, %s1039_s22   ;;  %s839_s21 = sphi %s899_s21, %s1038_s21  }
   0x5   : > { %s32_s29 = sadd.s32 1, %s855_s25  ;;  %s151_s30 = sadd.s32 1, %s847_s23 }
   0x6   : > { %p34_p0 = scmp.ge.s32.totalorder %s32_s29, 2  ;;  %p161_p1 = scmp.ne.s32.totalorder %s847_s23, %s843_s22 }
   0x7   : > { %p162_p2 = scmp.eq.s32.totalorder %s687_s27, 1  ;;  %p167_p3 = scmp.ne.s32.totalorder %s843_s22, %s839_s21 }
   0x8   : > { %s1044_s29 = smov (%p34_p0, %s32_s29), 0  ;;  %p168_p5 = scmp.eq.s32.totalorder %s688_s28, 1 }
   0x9   : > { %p939_p4 = por %p162_p2, %p161_p1  ;;  %s148_s8 = ssub.s32 %s855_s25, %s1044_s29 }
   0xa   : > { %p691_p6 = scmp.ge.s32.totalorder %s859_s26, 1  ;;  %p149_p7 = scmp.eq.s32.totalorder %s148_s8, 0 }
   0xb   : > { %p946_p8 = por %p168_p5, %p167_p3  ;;  %p239_p9 = scmp.lt.s32.totalorder %s859_s26, 3 }
   0xc   : > { %s952_s10 = scalar_select %p149_p7, %s847_s23, %s151_s30  }
   0xd   : > { %p240_p10 = pnand %p691_p6, %p239_p9 }
   0xe   : > { %p283_p11 = scmp.lt.s32.totalorder (!%p240_p10), %s851_s24, 1  ;;  %s702_s16 = sshll.u32 (!%p240_p10), %s851_s24, 3 }
   0xf   : > { %243 = sbr.rel (%p240_p10) target bundleno = 632 (0x278), region = 40  ;;  %s568_s19 = scalar_lea.hbm (!%p240_p10), %s1034_s5, %s702_s16 }
  0x14   : > { %v958_v0 = vld [vmem:[%s1033_s4] sm:$0xff]  ;;  %v861_v1 = vmov 0   ;;  %s961_s13 = scalar_select %p283_p11, %s851_s24, 1  ;;  %vm306_vm0 = vcmask 261120   ;;  %vm308_vm1 = vcmask 7168   ;;  %v862_v47 = vmov 0.0  }
  0x15   : > { %765 = vset.pattern.permute.xlu0 %v861_v1  ;;  %766 = vset.pattern.permute.xlu1 %v861_v1  ;;  %v311_v18 = vld [vmem:[%s1032_s3] sm:$0xff]  ;;  %309 = vst.msk [vmem:[#allocation3] sm:$0xff] %vm308_vm1, %v862_v47 }
  0x16   : > { %418 = vperm.xlu0 %765, %v958_v0   ;;  %s705_s14 = sshll.u32 %s961_s13, 6  ;;  %v310_v19 = vld [vmem:[%s1031_s2] sm:$0xff]  ;;  %307 = vst.msk [vmem:[#allocation2] sm:$0xff] %vm306_vm0, %v862_v47  ;;  %s706_s28 = sshll.u32 %s961_s13, 4 }
  0x17   : > { %s290_s17 = scalar_lea.vmem %s1029_s0, %s705_s14  ;;  %s300_s11 = scalar_lea.vmem %s1035_s6, %s706_s28 }
  0x18   : > { %v319_v2 = vld [vmem:[%s290_s17 + $0x30] sm:$0xff]  ;;  %v320_v3 = vld [vmem:[%s290_s17 + $0x38] sm:$0xff]  ;;  %v317_v4 = vld [vmem:[%s290_s17 + $0x20] sm:$0xff]  ;;  %s268_s14 = sand.u32 1, %s843_s22   ;;  %s572_s28 = sshll.u32 %s568_s19, 4  ;;  %s573_s28 = int_to_ptr.hbm [resolvable:$true] %s572_s28 }
  0x19   : > { %v327_v5 = vmul.f32 %v319_v2, %v319_v2  ;;  %v328_v6 = vmul.f32 %v320_v3, %v320_v3  ;;  %v325_v7 = vmul.f32 %v317_v4, %v317_v4  ;;  %v318_v8 = vld [vmem:[%s290_s17 + $0x28] sm:$0xff]  ;;  %v315_v9 = vld [vmem:[%s290_s17 + $0x10] sm:$0xff]  ;;  %v316_v10 = vld [vmem:[%s290_s17 + $0x18] sm:$0xff]  ;;  %473 = vmatpush.xpose.msra.mxu0 %v319_v2  ;;  %493 = vmatpush.xpose.msra.mxu1 %v320_v3  ;;  %s692_s15 = sshll.u32 %s268_s14, 3  ;;  %s549_s24 = scalar_lea.sflag [#allocation5], %s268_s14 }
  0x1a   : > { %v326_v11 = vmul.f32 %v318_v8, %v318_v8  ;;  %v313_v12 = vld [vmem:[%s290_s17] sm:$0xff]  ;;  %v314_v13 = vld [vmem:[%s290_s17 + $0x8] sm:$0xff]  ;;  %v323_v14 = vmul.f32 %v315_v9, %v315_v9  ;;  %v324_v15 = vmul.f32 %v316_v10, %v316_v10  ;;  %s270_s20 = scalar_lea.vmem [#allocation4], %s692_s15  ;;  %s795_s30 = sshra.s32 %s573_s28, 4  ;;  %s796_s30 = int_to_ptr.hbm [resolvable:$true] %s795_s30 }
  0x1b   : > { %345 = vmatpush.msra.mxu2 %v327_v5  ;;  %365 = vmatpush.msra.mxu3 %v328_v6  ;;  %v321_v16 = vmul.f32 %v313_v12, %v313_v12  ;;  %v322_v17 = vmul.f32 %v314_v13, %v314_v13  ;;  %s570_s27 = sshll.u32 %s270_s20, 4  ;;  %s797_s8 = scalar_lea.hbm %s796_s30, 8  ;;  %s571_s27 = int_to_ptr.vmem [resolvable:$true] %s570_s27 }
  0x1c   : > { %v504_v5 = vld [vmem:[#allocation3] sm:$0xff]  ;;  %p798_p12 = scmp.ne.s32.totalorder %s796_s30, %s797_s8  ;;  %s801_s13 = scalar_lea.hbm %s1034_s5, 16 }
  0x1d   : > { %346 = vmatpush.msra.mxu2 %v325_v7  ;;  %366 = vmatpush.msra.mxu3 %v326_v11  ;;  %p802_p1 = scmp.lt.s32.totalorder %s796_s30, %s1034_s5  ;;  %p803_p2 = scmp.lt.s32.totalorder %s801_s13, %s797_s8 }
  0x1e   : > { %474 = vmatpush.xpose.msra.mxu0 %v317_v4  ;;  %494 = vmatpush.xpose.msra.mxu1 %v318_v8  ;;  %p799_p13 = pnand %p798_p12, %p939_p4 }
  0x1f   : > { %347 = vmatpush.msra.mxu2 %v323_v14  ;;  %367 = vmatpush.msra.mxu3 %v324_v15  ;;  %p804_p3 = por %p803_p2, %p802_p1 }
  0x20   : > { %p800_p0 = pneg %p799_p13 }
  0x21   : > { %348 = vmatpush.msra.mxu2 %v321_v16  ;;  %368 = vmatpush.msra.mxu3 %v322_v17 }
  0x22   : > { %697 = vmatmul.msk.f32.vlgmr.msra.gmra.mxu2 %vm306_vm0, %v311_v18  ;;  %698 = vmatmul.msk.f32.vlgmr.msra.gmra.mxu3 %vm306_vm0, %v311_v18  ;;  %p805_p5 = pnand %p804_p3, %p800_p0 }
  0x23   : > { %388 = vmatpush.msrb.mxu2 %v319_v2  ;;  %408 = vmatpush.msrb.mxu3 %v320_v3 }
  0x24   : > { %475 = vmatpush.xpose.msra.mxu0 %v315_v9  ;;  %495 = vmatpush.xpose.msra.mxu1 %v316_v10 }
  0x25   : > { %389 = vmatpush.msrb.mxu2 %v317_v4  ;;  %409 = vmatpush.msrb.mxu3 %v318_v8  ;;  %v863_v4 = vmov 1  }
  0x26   : > { %768 = vset.pattern.permute.xlu0 %v863_v4 }
  0x27   : > { %390 = vmatpush.msrb.mxu2 %v315_v9  ;;  %410 = vmatpush.msrb.mxu3 %v316_v10  ;;  %v501_v10 = vld [vmem:[#allocation2] sm:$0xff] }
  0x28   : > { %476 = vmatpush.xpose.msra.mxu0 %v313_v12  ;;  %496 = vmatpush.xpose.msra.mxu1 %v314_v13 }
  0x29   : > { %391 = vmatpush.msrb.mxu2 %v313_v12  ;;  %411 = vmatpush.msrb.mxu3 %v314_v13 }
  0x2a   : > { %699 = vmatmul.msk.f32.vlgmr.msrb.gmra.mxu2 %vm306_vm0, %v310_v19  ;;  %700 = vmatmul.msk.f32.vlgmr.msrb.gmra.mxu3 %vm306_vm0, %v310_v19  ;;  %v514_v19 = vld [vmem:[%s1030_s1] sm:$0xff] }
  0x88   : > { %v419_v22 = vpop.permute.xlu0 %418 }
  0xa5   : > { %v350_v20 = vpop.f32.mrf.mxu2  ;;  %v370_v21 = vpop.f32.mrf.mxu3 }
  0xad   : > { %v393_v23 = vpop.f32.mrf.mxu2  ;;  %v413_v24 = vpop.f32.mrf.mxu3 }
  0xae   : > { %v394_v25 = vadd.f32 %v393_v23, %v350_v20  ;;  %v414_v26 = vadd.f32 %v413_v24, %v370_v21 }
  0xb0   : > { %v421_v27 = vsub.f32 %v394_v25, %v419_v22  ;;  %v422_v28 = vsub.f32 %v414_v26, %v419_v22 }
  0xb2   : > { %v423_v29 = vmin.f32 %v421_v27, 0.0  ;;  %v424_v30 = vmin.f32 %v422_v28, 0.0 }
  0xb4   : > { %v425_v31 = vrot.slane %v423_v29, 4  ;;  %v431_v32 = vrot.slane %v424_v30, 4 }
  0xb6   : > { %v426_v33 = vmax.f32 %v423_v29, %v425_v31  ;;  %v432_v34 = vmax.f32 %v424_v30, %v431_v32 }
  0xb8   : > { %v427_v35 = vrot.slane %v426_v33, 2  ;;  %v433_v36 = vrot.slane %v432_v34, 2 }
  0xba   : > { %v428_v37 = vmax.f32 %v426_v33, %v427_v35  ;;  %v434_v38 = vmax.f32 %v432_v34, %v433_v36 }
  0xbc   : > { %v429_v39 = vrot.slane %v428_v37, 1  ;;  %v435_v40 = vrot.slane %v434_v38, 1 }
  0xbe   : > { %v430_v41 = vmax.f32 %v428_v37, %v429_v39  ;;  %v436_v42 = vmax.f32 %v434_v38, %v435_v40 }
  0xc0   : > { %v437_v43 = vsub.f32 %v423_v29, %v430_v41  ;;  %v438_v44 = vsub.f32 %v424_v30, %v436_v42 }
  0xc2   : > { %v439_v45 = vmul.f32 1.442695, %v437_v43  ;;  %v441_v46 = vmul.f32 1.442695, %v438_v44 }
  0xc4   : > { %769 = vpow2.f32 %v439_v45 }
  0xc5   : > { %771 = vpow2.f32 %v441_v46 }
  0xca   : > { %v770_v48 = vpop.eup %769 }
  0xcb   : > { %v772_v49 = vpop.eup %771  ;;  %v443_v50 = vrot.slane %v770_v48, 4 }
  0xcc   : > { %v449_v51 = vrot.slane %v772_v49, 4 }
  0xcd   : > { %v444_v52 = vadd.f32 %v770_v48, %v443_v50 }
  0xce   : > { %v450_v53 = vadd.f32 %v772_v49, %v449_v51 }
  0xcf   : > { %v445_v54 = vrot.slane %v444_v52, 2 }
  0xd0   : > { %v451_v55 = vrot.slane %v450_v53, 2 }
  0xd1   : > { %v446_v56 = vadd.f32 %v445_v54, %v444_v52 }
  0xd2   : > { %v452_v57 = vadd.f32 %v451_v55, %v450_v53 }
  0xd3   : > { %v447_v58 = vrot.slane %v446_v56, 1 }
  0xd4   : > { %v453_v59 = vrot.slane %v452_v57, 1 }
  0xd5   : > { %v448_v60 = vadd.f32 %v447_v58, %v446_v56 }
  0xd6   : > { %v454_v61 = vadd.f32 %v453_v59, %v452_v57 }
  0xd7   : > { %773 = vrcp.f32 %v448_v60 }
  0xd8   : > { %775 = vrcp.f32 %v454_v61 }
  0xdd   : > { %v774_v62 = vpop.eup %773 }
  0xde   : > { %v776_v63 = vpop.eup %775  ;;  %v457_v1 = vmul.f32 %v774_v62, %v770_v48 }
  0xdf   : > { %v458_v2 = vmul.f32 %v776_v63, %v772_v49 }
  0xe0   : > { %459 = vst [vmem:[%s300_s11] sm:$0xff] %v457_v1  ;;  %477 = vmatmul.f32.vlgmr.msra.gmra.mxu0 %v457_v1 }
  0xe1   : > { %460 = vst [vmem:[%s300_s11 + $0x8] sm:$0xff] %v458_v2  ;;  %497 = vmatmul.f32.vlgmr.msra.gmra.mxu1 %v458_v2  ;;  %v505_v3 = vadd.f32 %v458_v2, %v457_v1 }
  0xe3   : > { %506 = vadd.xlane.f32.xlu0 %v505_v3 }
 0x156   : > { %v507_v6 = vpop.xlane.xlu0 %506 }
 0x157   : > { %v508_v7 = vadd.f32 %v507_v6, %v504_v5 }
 0x159   : > { %510 = vst.msk [vmem:[#allocation3] sm:$0xff] %vm308_vm1, %v508_v7 }
 0x15d   : > { %v478_v8 = vpop.f32.mrf.mxu0 }
 0x15e   : > { %v498_v9 = vpop.f32.mrf.mxu1 }
 0x15f   : > { %v499_v11 = vadd.f32 %v498_v9, %v478_v8 }
 0x160   : > { %v515_v12 = vld [vmem:[#allocation3] sm:$0xff] }
 0x161   : > { %v502_v13 = vadd.f32 %v501_v10, %v499_v11  ;;  %v516_v14 = vmax.f32 %v515_v12, 1e-05 }
 0x163   : > { %503 = vst.msk [vmem:[#allocation2] sm:$0xff] %vm306_vm0, %v502_v13  ;;  %777 = vrcp.f32 %v516_v14 }
 0x169   : > { %v778_v15 = vpop.eup %777 }
 0x16a   : > { %521 = vperm.xlu1 %766, %v778_v15   ;;  %v517_v17 = vld [vmem:[#allocation2] sm:$0xff] }
 0x172   : > { %767 = vset.pattern.permute.xlu1 %v863_v4 }
 0x173   : > { %527 = vperm.xlu1 %767, %v958_v0  }
 0x1dc   : > { %v522_v16 = vpop.permute.xlu1 %521 }
 0x1dd   : > { %v524_v18 = vmul.f32 %v522_v16, %v517_v17 }
 0x1df   : > { %v525_v20 = vsub.f32 %v524_v18, %v514_v19 }
 0x1e5   : > { %v528_v21 = vpop.permute.xlu1 %527 }
 0x1e6   : > { %v530_v22 = vmul.f32 %v528_v21, %v525_v20 }
 0x1e8   : > { %v531_v23 = vmul.f32 %v530_v22, %v530_v22 }
 0x1ea   : > { %v532_v24 = vsel %vm306_vm0, %v531_v23, 0.0 }
 0x1eb   : > { %533 = vadd.xlane.f32.xlu2 %v532_v24 }
 0x25e   : > { %v534_v25 = vpop.xlane.xlu2 %533 }
 0x25f   : > { %v535_v26 = vmax.f32 %v534_v25, 1e-24 }
 0x261   : > { %779 = vrsqrt.f32 %v535_v26  ;;  %vm542_vm3 = vweird.f32 %v535_v26 }
 0x267   : > { %v780_v27 = vpop.eup %779 }
 0x268   : > { %v537_v0 = vmul.f32 %v780_v27, %v535_v26  ;;  %vm543_vm2 = vweird.f32 %v780_v27 }
 0x269   : > { %vm544_vm4 = vmor %vm542_vm3, %vm543_vm2 }
 0x26a   : > { %v538_v28 = vmul.f32 %v780_v27, %v537_v0 }
 0x26c   : > { %v539_v29 = vmul.f32 0.5, %v538_v28 }
 0x26e   : > { %v540_v30 = vsub.f32 1.5, %v539_v29 }
 0x270   : > { %v541_v31 = vmul.f32 %v780_v27, %v540_v30 }
 0x272   : > { %v545_v32 = vsel %vm544_vm4, %v780_v27, %v541_v31 }
 0x273   : > { %v546_v33 = vmul.f32 %v545_v32, %v530_v22 }
 0x275   : > { %547 = vst.msk [vmem:[%s270_s20] sm:$0xff] %vm306_vm0, %v546_v33 }
 0x276   : > { %808 = shalt.err (!%p805_p5)
}
 0x277   : > { %707 = dma.vmem_to_hbm [thread:$0]  (%p939_p4), %s571_s27, 128, %s573_s28, %s549_s24  }
 0x278 PF: > { %p713_p6 = scmp.ge.s32.totalorder %s859_s26, 2  ;;  %s588_s14 = sand.u32 1, %s839_s21  }
 0x279   : > { %s589_s17 = scalar_lea.sflag [#allocation5], %s588_s14 }
 0x27a   : > { %p710_p7 = pnand %p713_p6, %p946_p8 }
 0x27c   : > { %p711_p9 = pneg %p710_p7 }
 0x27e   : > { %834 = dma.done.wait (%p711_p9), %s589_s17, 128  }
 0x27f   : > { %836 = vsyncadd (%p711_p9), %s589_s17, 4294967168  ;;  %s20_s26 = sadd.s32 1, %s859_s26   ;;  %s1038_s21 = smov %s843_s22 }
 0x280   : > { %p17_p10 = scmp.ge.s32.totalorder %s20_s26, 4   ;;  %s1039_s22 = smov %s847_s23 }
 0x281   : > { %s1040_s23 = smov %s952_s10  ;;  %s1041_s24 = smov %s855_s25 }
 0x282   : > { %s1042_s25 = smov %s1044_s29  ;;  %19 = sbr.rel (!%p17_p10) target bundleno = 4 (0x4), region = 95 }
 0x287   :  { %607 = vsyncpa [#allocation5], 1 }
 0x288   :  { %609 = vsyncpa [#allocation5 + $0x1], 1 }

</bundles_post_ra>
